<compile_context>
chip_gen: v7x
topology: tpu7x:2x2x1
jax: 0.10.0
libtpu: 0.0.40
codegen_flags: <defaults>
</compile_context>

<pallas_src>
import functools

import jax
import jax.numpy as jnp
from jax import lax
from jax.experimental import pallas as pl
from jax.experimental.pallas import tpu as pltpu

# ----------------------------------------------------------------------------
# Small synthetic config (stand-in for model_config.res34unet_params)
# ----------------------------------------------------------------------------
CONFIG = dict(
    out_encoder1=8, out_encoder2=8, out_encoder3=16, out_encoder4=32,
    out_encoder5=64, out_bottom=64,
    out_decoder5=16, out_decoder4=16, out_decoder3=16, out_decoder2=16,
    out_decoder1=16, out_logit=1,
)

_VMEM_LIMIT = 32 * 1024 * 1024  # safe on v5e / v6e / v7x


def _round_up(x, m):
    return ((x + m - 1) // m) * m


# ----------------------------------------------------------------------------
# Pallas kernels
# ----------------------------------------------------------------------------
def _conv_kernel(x_ref, w_ref, b_ref, *rest, kh, kw, Ho, Wo,
                 pre_act, post_act, has_res):
    """Direct (im2col-free) conv for one image.

    Accumulates the kh*kw shifted taps on the MXU in f32 and fuses
    bias + optional pre/post activation + residual add into the epilogue.
    """
    if has_res:
        res_ref, o_ref = rest
    else:
        (o_ref,) = rest
    cin = x_ref.shape[-1]
    cout = o_ref.shape[-1]
    acc = jnp.zeros((Ho * Wo, cout), jnp.float32)
    t = 0
    for i in range(kh):
        for j in range(kw):
            patch = x_ref[0, i:i + Ho, j:j + Wo, :]
            if pre_act == "relu":
                patch = jnp.maximum(patch, 0.0)
            acc = acc + jnp.dot(patch.reshape(Ho * Wo, cin), w_ref[t],
                                preferred_element_type=jnp.float32)
            t += 1
    acc = acc + b_ref[...]
    if has_res:
        acc = acc + res_ref[0]
    if post_act == "relu":
        acc = jnp.maximum(acc, 0.0)
    elif post_act == "sigmoid":
        acc = jax.nn.sigmoid(acc)
    o_ref[0] = acc.astype(o_ref.dtype)


@functools.partial(jax.jit,
                   static_argnames=("kh", "kw", "pad", "pre_act", "post_act"))
def _conv_fused(x, w, b, res, *, kh, kw, pad, pre_act, post_act):
    """Stride-1 conv on NHWC via the fused per-image Pallas kernel."""
    N, H, W, cin = x.shape
    cout = w.shape[-1]
    Hp, Wp = H + 2 * pad, W + 2 * pad
    Ho, Wo = Hp - kh + 1, Wp - kw + 1
    xp = jnp.pad(x, ((0, 0), (pad, pad), (pad, pad), (0, 0))) if pad else x
    wr = w.reshape(kh * kw, cin, cout)
    br = b.reshape(1, cout)
    has_res = res is not None

    args = [xp, wr, br]
    in_specs = [
        pl.BlockSpec((1, Hp, Wp, cin), lambda n: (n, 0, 0, 0)),
        pl.BlockSpec((kh * kw, cin, cout), lambda n: (0, 0, 0)),
        pl.BlockSpec((1, cout), lambda n: (0, 0)),
    ]
    if has_res:
        args.append(res.reshape(N, Ho * Wo, cout))
        in_specs.append(pl.BlockSpec((1, Ho * Wo, cout), lambda n: (n, 0, 0)))

    out = pl.pallas_call(
        functools.partial(_conv_kernel, kh=kh, kw=kw, Ho=Ho, Wo=Wo,
                          pre_act=pre_act, post_act=post_act, has_res=has_res),
        out_shape=jax.ShapeDtypeStruct((N, Ho * Wo, cout), jnp.float32),
        grid_spec=pltpu.PrefetchScalarGridSpec(
            num_scalar_prefetch=0,
            grid=(N,),
            in_specs=in_specs,
            out_specs=pl.BlockSpec((1, Ho * Wo, cout), lambda n: (n, 0, 0)),
        ),
        compiler_params=pltpu.CompilerParams(
            dimension_semantics=("parallel",),
            vmem_limit_bytes=_VMEM_LIMIT),
    )(*args)
    return out.reshape(N, Ho, Wo, cout)


def _mm_kernel(x_ref, w_ref, b_ref, *rest, pre_act, post_act, has_res):
    if has_res:
        res_ref, o_ref = rest
    else:
        (o_ref,) = rest
    x = x_ref[...]
    if pre_act == "relu":
        x = jnp.maximum(x, 0.0)
    y = jnp.dot(x, w_ref[...], preferred_element_type=jnp.float32) + b_ref[...]
    if has_res:
        y = y + res_ref[...]
    if post_act == "relu":
        y = jnp.maximum(y, 0.0)
    elif post_act == "sigmoid":
        y = jax.nn.sigmoid(y)
    o_ref[...] = y.astype(o_ref.dtype)


def pallas_matmul(x, w, b, res=None, pre_act="none", post_act="none"):
    """y = post_act(pre_act(x) @ w + b [+ res]).  x:(M,K) w:(K,N) b:(N,)."""
    M, K = x.shape
    Nn = w.shape[1]
    Mp = _round_up(M, 8)
    if Mp != M:  # never triggers for this model's shapes; kept for generality
        x = jnp.pad(x, ((0, Mp - M), (0, 0)))
        if res is not None:
            res = jnp.pad(res, ((0, Mp - M), (0, 0)))
    TM = 512 if (Mp % 512 == 0 and Mp > 512) else Mp
    has_res = res is not None

    args = [x, w, b.reshape(1, Nn)]
    in_specs = [
        pl.BlockSpec((TM, K), lambda i: (i, 0)),
        pl.BlockSpec((K, Nn), lambda i: (0, 0)),
        pl.BlockSpec((1, Nn), lambda i: (0, 0)),
    ]
    if has_res:
        args.append(res)
        in_specs.append(pl.BlockSpec((TM, Nn), lambda i: (i, 0)))

    out = pl.pallas_call(
        functools.partial(_mm_kernel, pre_act=pre_act, post_act=post_act,
                          has_res=has_res),
        out_shape=jax.ShapeDtypeStruct((Mp, Nn), jnp.float32),
        grid_spec=pltpu.PrefetchScalarGridSpec(
            num_scalar_prefetch=0,
            grid=(Mp // TM,),
            in_specs=in_specs,
            out_specs=pl.BlockSpec((TM, Nn), lambda i: (i, 0)),
        ),
        compiler_params=pltpu.CompilerParams(
            dimension_semantics=("parallel",),
            vmem_limit_bytes=_VMEM_LIMIT),
    )(*args)
    return out[:M] if Mp != M else out


def _sum_kernel(*refs, n_in, act):
    o_ref = refs[n_in]
    acc = refs[0][...]
    for r in refs[1:n_in]:
        acc = acc + r[...]
    if act == "relu":
        acc = jnp.maximum(acc, 0.0)
    o_ref[...] = acc


@functools.partial(jax.jit, static_argnames=("act",))
def pallas_sum(tensors, act="none"):
    """Lane-dense fused sum of N same-shaped tensors (+ optional relu)."""
    shape = tensors[0].shape
    total = 1
    for s in shape:
        total *= s
    lanes = 128
    tp = _round_up(total, lanes * 8)
    flats = [t.reshape(-1) for t in tensors]
    if tp != total:
        flats = [jnp.pad(f, (0, tp - total)) for f in flats]
    rows = tp // lanes
    TR = 512 if (rows % 512 == 0 and rows > 512) else rows
    mats = [f.reshape(rows, lanes) for f in flats]
    n_in = len(mats)
    out = pl.pallas_call(
        functools.partial(_sum_kernel, n_in=n_in, act=act),
        out_shape=jax.ShapeDtypeStruct((rows, lanes), jnp.float32),
        grid_spec=pltpu.PrefetchScalarGridSpec(
            num_scalar_prefetch=0,
            grid=(rows // TR,),
            in_specs=[pl.BlockSpec((TR, lanes), lambda i: (i, 0))
                      for _ in range(n_in)],
            out_specs=pl.BlockSpec((TR, lanes), lambda i: (i, 0)),
        ),
        compiler_params=pltpu.CompilerParams(dimension_semantics=("parallel",)),
    )(*mats)
    out = out.reshape(-1)
    if tp != total:
        out = out[:total]
    return out.reshape(shape)


def _scse_kernel(x_ref, cg_ref, sw_ref, sb_ref, o_ref):
    x = x_ref[0]                                               # (HW, C)
    # spatial gate: 1x1 conv (C -> 1) computed as a lane reduce, fused here
    sg = jax.nn.sigmoid(jnp.sum(x * sw_ref[...], axis=-1, keepdims=True)
                        + sb_ref[...])
    o_ref[0] = x * cg_ref[0] + x * sg


@jax.jit
def scse(x, p):
    """scSE: tiny channel-squeeze FCs in plain XLA, spatial gate + combine in
    a single fused Pallas kernel (one launch per module)."""
    N, H, W, C = x.shape
    z = jnp.mean(x, axis=(1, 2))                               # (N, C) tiny
    h = jax.nn.relu(z @ p["fc1_w"] + p["fc1_b"])
    cg = jax.nn.sigmoid(h @ p["fc2_w"] + p["fc2_b"])           # channel gate
    sw = p["sconv"]["w"].reshape(1, C)
    sb = p["sconv"]["b"].reshape(1, 1)
    HW = H * W
    out = pl.pallas_call(
        _scse_kernel,
        out_shape=jax.ShapeDtypeStruct((N, HW, C), jnp.float32),
        grid_spec=pltpu.PrefetchScalarGridSpec(
            num_scalar_prefetch=0,
            grid=(N,),
            in_specs=[
                pl.BlockSpec((1, HW, C), lambda n: (n, 0, 0)),
                pl.BlockSpec((1, 1, C), lambda n: (n, 0, 0)),
                pl.BlockSpec((1, C), lambda n: (0, 0)),
                pl.BlockSpec((1, 1), lambda n: (0, 0)),
            ],
            out_specs=pl.BlockSpec((1, HW, C), lambda n: (n, 0, 0)),
        ),
        compiler_params=pltpu.CompilerParams(dimension_semantics=("parallel",)),
    )(x.reshape(N, HW, C), cg.reshape(N, 1, C), sw, sb)
    return out.reshape(N, H, W, C)


# ----------------------------------------------------------------------------
# Conv wrappers (fused path + im2col fallback for strided / tiny maps)
# ----------------------------------------------------------------------------
def _im2col(x, kh, kw, stride, pad):
    N, H, W, C = x.shape
    xp = jnp.pad(x, ((0, 0), (pad, pad), (pad, pad), (0, 0)))
    Hp, Wp = H + 2 * pad, W + 2 * pad
    Ho = (Hp - kh) // stride + 1
    Wo = (Wp - kw) // stride + 1
    cols = []
    for i in range(kh):
        for j in range(kw):
            cols.append(xp[:, i:i + (Ho - 1) * stride + 1:stride,
                           j:j + (Wo - 1) * stride + 1:stride, :])
    cols = jnp.concatenate(cols, axis=-1)  # (N, Ho, Wo, kh*kw*C)
    return cols, (N, Ho, Wo)


@functools.partial(
    jax.jit,
    static_argnames=("kh", "kw", "stride", "pad", "pre_act", "post_act"))
def _conv_im2col(x, w, b, res, *, kh, kw, stride, pad, pre_act, post_act):
    cin = x.shape[-1]
    cout = w.shape[-1]
    cols, (N, Ho, Wo) = _im2col(x, kh, kw, stride, pad)
    r2 = None if res is None else res.reshape(N * Ho * Wo, cout)
    y = pallas_matmul(cols.reshape(N * Ho * Wo, kh * kw * cin),
                      w.reshape(kh * kw * cin, cout), b,
                      res=r2, pre_act=pre_act, post_act=post_act)
    return y.reshape(N, Ho, Wo, cout)


_FUSED_CONV_OK = True  # flipped off if the fused kernel fails to lower


def conv2d(x, p, stride=1, pad=None, pre_act="none", post_act="none", res=None):
    global _FUSED_CONV_OK
    w, b = p["w"], p["b"]
    kh, kw, cin, cout = w.shape
    if pad is None:
        pad = kh // 2
    N, H, W, _ = x.shape
    Wo = (W + 2 * pad - kw) // stride + 1
    if stride == 1 and Wo % 8 == 0 and _FUSED_CONV_OK:
        try:
            return _conv_fused(x, w, b, res, kh=kh, kw=kw, pad=pad,
                               pre_act=pre_act, post_act=post_act)
        except Exception:  # safety net: fall back to the validated path
            _FUSED_CONV_OK = False
    return _conv_im2col(x, w, b, res, kh=kh, kw=kw, stride=stride, pad=pad,
                        pre_act=pre_act, post_act=post_act)


def maxpool(x, k, stride, pad):
    # TODO(synk): pooling done with lax.reduce_window (plain JAX) rather than a Pallas kernel.
    return lax.reduce_window(x, -jnp.inf, lax.max,
                             (1, k, k, 1), (1, stride, stride, 1),
                             ((0, 0), (pad, pad), (pad, pad), (0, 0)))


def upsample_nearest(x, s):
    # TODO(synk): reference decoder may use bilinear; nearest-neighbour repeat kept in XLA.
    if s == 1:
        return x
    return jnp.repeat(jnp.repeat(x, s, axis=1), s, axis=2)


# ----------------------------------------------------------------------------
# Deterministic parameter construction (BatchNorm folded into convs, eval mode)
# ----------------------------------------------------------------------------
class PGen:
    def __init__(self, key):
        self._key = key

    def key(self):
        self._key, sub = jax.random.split(self._key)
        return sub

    def conv(self, kh, kw, cin, cout, bias=True):
        fan_in = kh * kw * cin
        w = jax.random.normal(self.key(), (kh, kw, cin, cout), jnp.float32)
        w = w * (2.0 / fan_in) ** 0.5 * 0.5
        if bias:
            b = 0.01 * jax.random.normal(self.key(), (cout,), jnp.float32)
        else:
            b = jnp.zeros((cout,), jnp.float32)
        return {"w": w, "b": b}

    def conv_bn(self, kh, kw, cin, cout):
        p = self.conv(kh, kw, cin, cout, bias=False)
        gamma = 1.0 + 0.1 * jax.random.normal(self.key(), (cout,), jnp.float32)
        beta = 0.05 * jax.random.normal(self.key(), (cout,), jnp.float32)
        mean = 0.05 * jax.random.normal(self.key(), (cout,), jnp.float32)
        var = jnp.abs(1.0 + 0.1 * jax.random.normal(self.key(), (cout,), jnp.float32))
        scale = gamma / jnp.sqrt(var + 1e-5)
        return {"w": p["w"] * scale, "b": (p["b"] - mean) * scale + beta}


def make_basic_block(pg, cin, cout, stride):
    blk = {"conv1": pg.conv_bn(3, 3, cin, cout),
           "conv2": pg.conv_bn(3, 3, cout, cout),
           "stride": stride}
    if stride != 1 or cin != cout:
        blk["down"] = pg.conv_bn(1, 1, cin, cout)
    return blk


def make_layer(pg, cin, cout, nblocks, stride):
    blocks = [make_basic_block(pg, cin, cout, stride)]
    for _ in range(nblocks - 1):
        blocks.append(make_basic_block(pg, cout, cout, 1))
    return blocks


def make_scse(pg, c):
    r = max(c // 2, 1)
    return {
        "fc1_w": jax.random.normal(pg.key(), (c, r), jnp.float32) * (2.0 / c) ** 0.5 * 0.5,
        "fc1_b": jnp.zeros((r,), jnp.float32),
        "fc2_w": jax.random.normal(pg.key(), (r, c), jnp.float32) * (2.0 / r) ** 0.5 * 0.5,
        "fc2_b": jnp.zeros((c,), jnp.float32),
        "sconv": pg.conv(1, 1, c, 1),
    }


def make_decoder(pg, cin, cout):
    return {"c1": pg.conv_bn(3, 3, cin, cout), "c2": pg.conv_bn(3, 3, cout, cout)}


def make_rcu(pg, c):
    return {"c1": pg.conv(3, 3, c, c, bias=False), "c2": pg.conv(3, 3, c, c, bias=False)}


def build_params(key):
    pg = PGen(key)
    c = CONFIG
    e1, e2, e3, e4, e5 = (c["out_encoder1"], c["out_encoder2"], c["out_encoder3"],
                          c["out_encoder4"], c["out_encoder5"])
    bot = c["out_bottom"]
    d5, d4, d3, d2, d1 = (c["out_decoder5"], c["out_decoder4"], c["out_decoder3"],
                          c["out_decoder2"], c["out_decoder1"])
    P = {}
    P["enc1"] = pg.conv_bn(7, 7, 3, e1)
    P["layer1"] = make_layer(pg, e1, e2, 3, 1)
    P["layer2"] = make_layer(pg, e2, e3, 4, 2)
    P["layer3"] = make_layer(pg, e3, e4, 6, 2)
    P["layer4"] = make_layer(pg, e4, e5, 3, 2)
    P["se2"], P["se3"] = make_scse(pg, e2), make_scse(pg, e3)
    P["se4"], P["se5"] = make_scse(pg, e4), make_scse(pg, e5)
    P["bot1"] = pg.conv_bn(3, 3, e5, bot)
    P["bot2"] = pg.conv_bn(3, 3, bot, bot)
    P["dec5"], P["sed5"] = make_decoder(pg, bot + e5, d5), make_scse(pg, d5)
    P["dec4"], P["sed4"] = make_decoder(pg, d5 + e4, d4), make_scse(pg, d4)
    P["dec3"], P["sed3"] = make_decoder(pg, d4 + e3, d3), make_scse(pg, d3)
    P["dec2"], P["sed2"] = make_decoder(pg, d3 + e2, d2), make_scse(pg, d2)
    P["dec1"], P["sed1"] = make_decoder(pg, d2, d1), make_scse(pg, d1)
    P["hyper_bot"] = pg.conv(1, 1, bot, d1)
    P["hyper5"] = pg.conv(1, 1, d5, d1)
    P["hyper4"] = pg.conv(1, 1, d4, d1)
    P["hyper3"] = pg.conv(1, 1, d3, d1)
    P["hyper2"] = pg.conv(1, 1, d2, d1)
    P["hyper1"] = pg.conv(1, 1, d1, d1)
    P["rn_rcu"] = [[make_rcu(pg, d1), make_rcu(pg, d1)] for _ in range(6)]
    P["rn_mrf"] = [pg.conv(3, 3, d1, d1, bias=False) for _ in range(6)]
    P["rn_crp"] = [pg.conv(3, 3, d1, d1, bias=False) for _ in range(4)]
    P["rn_out"] = make_rcu(pg, d1)
    P["rcu2"] = [make_rcu(pg, d1), make_rcu(pg, d1)]
    P["logit"] = pg.conv(1, 1, d1, c["out_logit"])
    return P


# ----------------------------------------------------------------------------
# Forward-pass building blocks
# ----------------------------------------------------------------------------
def basic_block(x, p):
    out = conv2d(x, p["conv1"], stride=p["stride"], post_act="relu")
    if "down" in p:
        sc = conv2d(x, p["down"], stride=p["stride"], pad=0)
    else:
        sc = x
    # residual add + relu fused into the second conv's epilogue
    return conv2d(out, p["conv2"], stride=1, res=sc, post_act="relu")


def run_layer(x, blocks):
    for blk in blocks:
        x = basic_block(x, blk)
    return x


def decoder(x, p):
    # TODO(synk): nearest upsample kept as XLA repeat; fusing it into the next conv's
    # gather would remove one materialized tensor per decoder stage.
    x = upsample_nearest(x, 2)
    x = conv2d(x, p["c1"], post_act="relu")
    x = conv2d(x, p["c2"], post_act="relu")
    return x


def rcu(x, p):
    # ResidualConvUnit: x + conv(relu(conv(relu(x)))) -- residual fused into conv2
    out = conv2d(x, p["c1"], pre_act="relu", post_act="relu")
    return conv2d(out, p["c2"], res=x)


def refine_net(P, inputs):
    # inputs ordered largest (h1) -> smallest (hbot)
    target = inputs[0].shape[1]
    paths = []
    for i, h in enumerate(inputs):
        t = rcu(h, P["rn_rcu"][i][0])
        t = rcu(t, P["rn_rcu"][i][1])
        t = conv2d(t, P["rn_mrf"][i])                 # multi-resolution fusion conv
        t = upsample_nearest(t, target // t.shape[1])
        paths.append(t)
    # single lane-dense 6-way fused sum, with the standalone ReLU folded in
    x = pallas_sum(paths, act="relu")
    # chained residual pooling: x + p1 + p2 + p3 + p4 collected as one fused sum
    crp_terms = [x]
    path = x
    for cp in P["rn_crp"]:
        path = maxpool(path, 5, 1, 2)
        path = conv2d(path, cp)
        crp_terms.append(path)
    x = pallas_sum(crp_terms)
    return rcu(x, P["rn_out"])


def forward(P, x_nchw):
    x = jnp.transpose(x_nchw, (0, 2, 3, 1)).astype(jnp.float32)   # NCHW -> NHWC
    e1 = conv2d(x, P["enc1"], stride=2, pad=3, post_act="relu")
    t = maxpool(e1, 3, 2, 1)
    e2 = scse(run_layer(t, P["layer1"]), P["se2"])
    e3 = scse(run_layer(e2, P["layer2"]), P["se3"])
    e4 = scse(run_layer(e3, P["layer3"]), P["se4"])
    e5 = scse(run_layer(e4, P["layer4"]), P["se5"])
    d = conv2d(e5, P["bot1"], post_act="relu")
    d = conv2d(d, P["bot2"], post_act="relu")
    hbot = conv2d(d, P["hyper_bot"], pad=0)

    d = scse(decoder(jnp.concatenate([d, e5], -1), P["dec5"]), P["sed5"])
    h5 = conv2d(d, P["hyper5"], pad=0)
    d = scse(decoder(jnp.concatenate([d, e4], -1), P["dec4"]), P["sed4"])
    h4 = conv2d(d, P["hyper4"], pad=0)
    d = scse(decoder(jnp.concatenate([d, e3], -1), P["dec3"]), P["sed3"])
    h3 = conv2d(d, P["hyper3"], pad=0)
    d = scse(decoder(jnp.concatenate([d, e2], -1), P["dec2"]), P["sed2"])
    h2 = conv2d(d, P["hyper2"], pad=0)
    d = scse(decoder(d, P["dec1"]), P["sed1"])
    h1 = conv2d(d, P["hyper1"], pad=0)

    h = refine_net(P, [h1, h2, h3, h4, h5, hbot])
    h = rcu(h, P["rcu2"][0])
    h = rcu(h, P["rcu2"][1])
    # Dropout2d(p=0.4) is identity at inference.
    # TODO(synk): training-mode channel dropout not implemented.
    h = conv2d(h, P["logit"], pad=0)
    return jnp.transpose(h, (0, 3, 1, 2))                         # NHWC -> NCHW


# ----------------------------------------------------------------------------
if __name__ == "__main__":
    key = jax.random.PRNGKey(0)
    pkey, xkey = jax.random.split(key)
    params = build_params(pkey)
    x = jax.random.normal(xkey, (2, 3, 64, 64), jnp.float32)      # NCHW, like PyTorch
    out = forward(params, x)
    out = jax.block_until_ready(out)
    assert out.shape == (2, CONFIG["out_logit"], 64, 64), out.shape
    assert bool(jnp.all(jnp.isfinite(out)))
    print("KERNEL_OK")
</pallas_src>

<mosaic_0001>
module attributes {stable_mosaic.version = 11 : i64} {
  func.func @_mm_kernel(%arg0: i32, %arg1: memref<512x147xf32, #tpu.memory_space<vmem>>, %arg2: memref<147x8xf32, #tpu.memory_space<vmem>>, %arg3: memref<1x8xf32, #tpu.memory_space<vmem>>, %arg4: memref<512x8xf32, #tpu.memory_space<vmem>>) attributes {dimension_semantics = [#tpu.dimension_semantics<parallel>], iteration_bounds = array<i64: 4>, scalar_prefetch = 0 : i64, scratch_operands = 0 : i64, tpu.core_type = #tpu.core_type<tc>, window_params = [{transform_indices = @transform_0, window_bounds = array<i64: 512, 147>}, {pipeline_mode = #tpu.pipeline_mode<synchronous>, transform_indices = @transform_1, window_bounds = array<i64: 147, 8>}, {pipeline_mode = #tpu.pipeline_mode<synchronous>, transform_indices = @transform_2, window_bounds = array<i64: 1, 8>}, {transform_indices = @transform_3, window_bounds = array<i64: 512, 8>}]} {
    %c0 = arith.constant 0 : index
    %c0_0 = arith.constant 0 : index
    %0 = vector.load %arg1[%c0, %c0_0] : memref<512x147xf32, #tpu.memory_space<vmem>>, vector<512x147xf32>
    %c0_1 = arith.constant 0 : index
    %c0_2 = arith.constant 0 : index
    %1 = vector.load %arg2[%c0_1, %c0_2] : memref<147x8xf32, #tpu.memory_space<vmem>>, vector<147x8xf32>
    %cst = arith.constant dense<0.000000e+00> : vector<512x8xf32>
    %2 = tpu.matmul %0, %1, %cst {dimension_numbers = #tpu.dot_dimension_numbers<[1], [0], [0], [1], [0, 0, 1, 1], [], []>} : vector<512x147xf32>, vector<147x8xf32>, vector<512x8xf32> -> vector<512x8xf32>
    %c0_3 = arith.constant 0 : index
    %c0_4 = arith.constant 0 : index
    %3 = vector.load %arg3[%c0_3, %c0_4] : memref<1x8xf32, #tpu.memory_space<vmem>>, vector<1x8xf32>
    %4 = vector.broadcast %3 : vector<1x8xf32> to vector<512x8xf32>
    %5 = arith.addf %2, %4 : vector<512x8xf32>
    %cst_5 = arith.constant 0.000000e+00 : f32
    %6 = vector.broadcast %cst_5 : f32 to vector<512x8xf32>
    %7 = arith.maximumf %5, %6 : vector<512x8xf32>
    %c0_6 = arith.constant 0 : index
    %c0_7 = arith.constant 0 : index
    %8 = vector.load %arg4[%c0_6, %c0_7] : memref<512x8xf32, #tpu.memory_space<vmem>>, vector<512x8xf32>
    tpu.vector_store %arg4[%c0_6, %c0_7], %7 {strides = array<i32>} : memref<512x8xf32, #tpu.memory_space<vmem>>, vector<512x8xf32>,
    return
  }
  func.func @transform_0(%arg0: i32) -> (i32, i32) {
    %c0_i32 = arith.constant 0 : i32
    %c0_i32_0 = arith.constant 0 : i32
    return %arg0, %c0_i32 : i32, i32
  }
  func.func @transform_1(%arg0: i32) -> (i32, i32) {
    %c0_i32 = arith.constant 0 : i32
    %c0_i32_0 = arith.constant 0 : i32
    %c0_i32_1 = arith.constant 0 : i32
    return %c0_i32, %c0_i32_0 : i32, i32
  }
  func.func @transform_2(%arg0: i32) -> (i32, i32) {
    %c0_i32 = arith.constant 0 : i32
    %c0_i32_0 = arith.constant 0 : i32
    %c0_i32_1 = arith.constant 0 : i32
    return %c0_i32, %c0_i32_0 : i32, i32
  }
  func.func @transform_3(%arg0: i32) -> (i32, i32) {
    %c0_i32 = arith.constant 0 : i32
    %c0_i32_0 = arith.constant 0 : i32
    return %arg0, %c0_i32 : i32, i32
  }
}

</mosaic_0001>

<bundles_post_ra>
// kernel: _conv_im2col.1
= control target key start
LH: loop header
LB: loop body
LE: loop exit
PB: predicated region body
PF: predicated region fallthrough
CT: control target
= control target key end

     0   :  { %s1264_s12 = smov 0   ;;  %s1753_s0 = inlined_call_operand.vmem [shape: f32[2048,147], index: 0, kind: input, shape index: {}]   ;;  %s1754_s1 = inlined_call_operand.vmem [shape: f32[147,8], index: 1, kind: input, shape index: {}]   ;;  %s1755_s2 = inlined_call_operand.vmem [shape: f32[1,8], index: 2, kind: input, shape index: {}]   ;;  %s1756_s3 = inlined_call_operand.vmem [shape: f32[2048,8], index: 3, kind: output, shape index: {}]  }
   0x1 LB: > { %s1098_s13 = sadd.s32 4294967295, %s1240_s12   ;;  %p1102_p0 = scmp.ge.s32.totalorder %s1240_s12, 1  ;;  %s1240_s12 = sphi %s1264_s12, %s13_s12  }
   0x2   : > { %p139_p1 = scmp.lt.s32.totalorder %s1240_s12, 5 }
   0x4   : > { %p140_p2 = pnand %p1102_p0, %p139_p1 }
   0x5   : > { %v305_v0 = vld [vmem:[%s1754_s1] sm:$0xff] (!%p140_p2)  ;;  %v306_v1 = vld [vmem:[%s1754_s1 + $0x8] sm:$0xff] (!%p140_p2)  ;;  %v307_v2 = vld [vmem:[%s1754_s1 + $0x10] sm:$0xff] (!%p140_p2)  ;;  %v1242_v3 = vmov (!%p140_p2), 0.0|0.0   ;;  %s1103_s22 = sshll.u32 (!%p140_p2), %s1098_s13, 6  ;;  %vm331_vm0 = vcmask (!%p140_p2), 154624  }
   0x6   : > { %143 = sbr.rel (%p140_p2) target bundleno = 386 (0x182), region = 32  ;;  %1177 = vmatprep.subr.bf16.mxu0 (!%p140_p2), %v1242_v3  ;;  %1204 = vmatprep.subr.bf16.mxu1 (!%p140_p2), %v1242_v3  ;;  %v1178_v4 = vpack.c.bf16 (!%p140_p2), %v306_v1, %v305_v0  ;;  %v308_v5 = vld [vmem:[%s1754_s1 + $0x18] sm:$0xff] (!%p140_p2)  ;;  %p165_p3 = scmp.lt.s32.totalorder (!%p140_p2), %s1103_s22, 255  ;;  %v309_v7 = vld [vmem:[%s1754_s1 + $0x20] sm:$0xff] (!%p140_p2)  ;;  %v310_v8 = vld [vmem:[%s1754_s1 + $0x28] sm:$0xff] (!%p140_p2)  ;;  %v1243_v30 = vmov (!%p140_p2), 0.0  }
   0x7   : > { %v1181_v6 = vpack.c.bf16 (!%p140_p2), %v308_v5, %v307_v2  ;;  %v1184_v9 = vpack.c.bf16 (!%p140_p2), %v310_v8, %v309_v7  ;;  %v311_v10 = vld [vmem:[%s1754_s1 + $0x30] sm:$0xff] (!%p140_p2)  ;;  %v312_v11 = vld [vmem:[%s1754_s1 + $0x38] sm:$0xff] (!%p140_p2)  ;;  %v313_v15 = vld [vmem:[%s1754_s1 + $0x40] sm:$0xff] (!%p140_p2)  ;;  %vm524_vm1 = vcmask (!%p140_p2), 1042432   ;;  %vm977_vm2 = vcmask (!%p140_p2), 64512  }
   0x8   : > { %1179 = vmatpush1.bf16.msra.mxu0 (!%p140_p2), %v1178_v4  ;;  %1214 = vmatpush1.bf16.msra.mxu1 (!%p140_p2), %v1178_v4  ;;  %v1187_v14 = vpack.c.bf16 (!%p140_p2), %v312_v11, %v311_v10  ;;  %v314_v16 = vld [vmem:[%s1754_s1 + $0x48] sm:$0xff] (!%p140_p2)  ;;  %v315_v18 = vld [vmem:[%s1754_s1 + $0x50] sm:$0xff] (!%p140_p2)  ;;  %v316_v19 = vld [vmem:[%s1754_s1 + $0x58] sm:$0xff] (!%p140_p2) }
   0x9   : > { %1180 = vmatprep.subr.bf16.mxu0 (!%p140_p2), %v1242_v3  ;;  %1205 = vmatprep.subr.bf16.mxu1 (!%p140_p2), %v1242_v3  ;;  %v1190_v17 = vpack.c.bf16 (!%p140_p2), %v314_v16, %v313_v15  ;;  %v1193_v20 = vpack.c.bf16 (!%p140_p2), %v316_v19, %v315_v18  ;;  %v317_v21 = vld [vmem:[%s1754_s1 + $0x60] sm:$0xff] (!%p140_p2)  ;;  %v318_v22 = vld [vmem:[%s1754_s1 + $0x68] sm:$0xff] (!%p140_p2)  ;;  %v319_v24 = vld [vmem:[%s1754_s1 + $0x70] sm:$0xff] (!%p140_p2) }
   0xa   : > { %v1196_v23 = vpack.c.bf16 (!%p140_p2), %v318_v22, %v317_v21  ;;  %v320_v25 = vld [vmem:[%s1754_s1 + $0x78] sm:$0xff] (!%p140_p2)  ;;  %v321_v27 = vld [vmem:[%s1754_s1 + $0x80] sm:$0xff] (!%p140_p2)  ;;  %v322_v28 = vld [vmem:[%s1754_s1 + $0x88] sm:$0xff] (!%p140_p2) }
   0xb   : > { %v1199_v26 = vpack.c.bf16 (!%p140_p2), %v320_v25, %v319_v24  ;;  %v1202_v29 = vpack.c.bf16 (!%p140_p2), %v322_v28, %v321_v27  ;;  %v323_v31 = vld [vmem:[%s1754_s1 + $0x90] sm:$0x7] (!%p140_p2) }
   0xc   : > { %1182 = vmatpush1.bf16.msra.mxu0 (!%p140_p2), %v1181_v6  ;;  %1215 = vmatpush1.bf16.msra.mxu1 (!%p140_p2), %v1181_v6 }
   0xd   : > { %s1758_s22 = smov (!%p165_p3, %s1103_s22), 255  ;;  %1183 = vmatprep.subr.bf16.mxu0 %v1242_v3  ;;  %1206 = vmatprep.subr.bf16.mxu1 %v1242_v3 }
   0xe   : > { %s1176_s27 = sshll.u32 %s1758_s22, 4  ;;  %s1107_s8 = sshll.u32 %s1758_s22, 3 }
   0xf   : > { %s1303_s5 = scalar_lea.vmem %s1753_s0, %s1176_s27 }
  0x10   : > { %v178_v12 = vld [vmem:[%s1303_s5 + $0x8] sm:$0xff]  ;;  %1185 = vmatpush1.bf16.msra.mxu0 %v1184_v9  ;;  %1216 = vmatpush1.bf16.msra.mxu1 %v1184_v9  ;;  %v177_v32 = vld [vmem:[%s1303_s5] sm:$0xff]  ;;  %v180_v34 = vld [vmem:[%s1303_s5 + $0x18] sm:$0xff] }
  0x11   : > { %v242_v13 = vld [vmem:[%s1303_s5 + $0x208] sm:$0xff]  ;;  %1110 = vmatprep.mubr.msk.f32.mxu0 %vm331_vm0, %v178_v12  ;;  %1186 = vmatprep.subr.bf16.mxu0 %v1242_v3  ;;  %v241_v33 = vld [vmem:[%s1303_s5 + $0x200] sm:$0xff]  ;;  %v244_v35 = vld [vmem:[%s1303_s5 + $0x218] sm:$0xff] }
  0x12   : > { %1142 = vmatprep.mubr.msk.f32.mxu1 %vm331_vm0, %v242_v13  ;;  %1207 = vmatprep.subr.bf16.mxu1 %v1242_v3  ;;  %v179_v36 = vld [vmem:[%s1303_s5 + $0x10] sm:$0xff]  ;;  %v182_v38 = vld [vmem:[%s1303_s5 + $0x28] sm:$0xff]  ;;  %v181_v40 = vld [vmem:[%s1303_s5 + $0x20] sm:$0xff] }
  0x13   : > { %v243_v37 = vld [vmem:[%s1303_s5 + $0x210] sm:$0xff]  ;;  %v246_v39 = vld [vmem:[%s1303_s5 + $0x228] sm:$0xff]  ;;  %v245_v41 = vld [vmem:[%s1303_s5 + $0x220] sm:$0xff] }
  0x14   : > { %1188 = vmatpush1.bf16.msra.mxu0 %v1187_v14  ;;  %1217 = vmatpush1.bf16.msra.mxu1 %v1187_v14  ;;  %v184_v42 = vld [vmem:[%s1303_s5 + $0x38] sm:$0xff]  ;;  %v183_v44 = vld [vmem:[%s1303_s5 + $0x30] sm:$0xff]  ;;  %v186_v46 = vld [vmem:[%s1303_s5 + $0x48] sm:$0xff] }
  0x15   : > { %1189 = vmatprep.subr.bf16.mxu0 %v1242_v3  ;;  %1208 = vmatprep.subr.bf16.mxu1 %v1242_v3  ;;  %v248_v43 = vld [vmem:[%s1303_s5 + $0x238] sm:$0xff]  ;;  %v247_v45 = vld [vmem:[%s1303_s5 + $0x230] sm:$0xff]  ;;  %v250_v47 = vld [vmem:[%s1303_s5 + $0x248] sm:$0xff] }
  0x16   : > { %v185_v48 = vld [vmem:[%s1303_s5 + $0x40] sm:$0xff]  ;;  %v188_v50 = vld [vmem:[%s1303_s5 + $0x58] sm:$0xff]  ;;  %v187_v52 = vld [vmem:[%s1303_s5 + $0x50] sm:$0xff] }
  0x17   : > { %v249_v49 = vld [vmem:[%s1303_s5 + $0x240] sm:$0xff]  ;;  %v252_v51 = vld [vmem:[%s1303_s5 + $0x258] sm:$0xff]  ;;  %v251_v53 = vld [vmem:[%s1303_s5 + $0x250] sm:$0xff] }
  0x18   : > { %1191 = vmatpush1.bf16.msra.mxu0 %v1190_v17  ;;  %1218 = vmatpush1.bf16.msra.mxu1 %v1190_v17  ;;  %v190_v54 = vld [vmem:[%s1303_s5 + $0x68] sm:$0xff]  ;;  %v189_v56 = vld [vmem:[%s1303_s5 + $0x60] sm:$0xff]  ;;  %v192_v58 = vld [vmem:[%s1303_s5 + $0x78] sm:$0xff] }
  0x19   : > { %1192 = vmatprep.subr.bf16.mxu0 %v1242_v3  ;;  %1209 = vmatprep.subr.bf16.mxu1 %v1242_v3  ;;  %v254_v55 = vld [vmem:[%s1303_s5 + $0x268] sm:$0xff]  ;;  %v253_v57 = vld [vmem:[%s1303_s5 + $0x260] sm:$0xff]  ;;  %v256_v59 = vld [vmem:[%s1303_s5 + $0x278] sm:$0xff] }
  0x1a   : > { %v191_v60 = vld [vmem:[%s1303_s5 + $0x70] sm:$0xff]  ;;  %v194_v62 = vld [vmem:[%s1303_s5 + $0x88] sm:$0xff]  ;;  %v193_v0 = vld [vmem:[%s1303_s5 + $0x80] sm:$0xff] }
  0x1b   : > { %v255_v61 = vld [vmem:[%s1303_s5 + $0x270] sm:$0xff]  ;;  %v258_v63 = vld [vmem:[%s1303_s5 + $0x288] sm:$0xff]  ;;  %v257_v1 = vld [vmem:[%s1303_s5 + $0x280] sm:$0xff] }
  0x1c   : > { %1194 = vmatpush1.bf16.msra.mxu0 %v1193_v20  ;;  %1219 = vmatpush1.bf16.msra.mxu1 %v1193_v20  ;;  %v196_v2 = vld [vmem:[%s1303_s5 + $0x98] sm:$0xff]  ;;  %v195_v4 = vld [vmem:[%s1303_s5 + $0x90] sm:$0xff]  ;;  %v198_v6 = vld [vmem:[%s1303_s5 + $0xa8] sm:$0xff] }
  0x1d   : > { %1195 = vmatprep.subr.bf16.mxu0 %v1242_v3  ;;  %1210 = vmatprep.subr.bf16.mxu1 %v1242_v3  ;;  %v259_v5 = vld [vmem:[%s1303_s5 + $0x290] sm:$0xff]  ;;  %v262_v7 = vld [vmem:[%s1303_s5 + $0x2a8] sm:$0xff]  ;;  %v197_v8 = vld [vmem:[%s1303_s5 + $0xa0] sm:$0xff] }
  0x1e   : > { %v261_v9 = vld [vmem:[%s1303_s5 + $0x2a0] sm:$0xff]  ;;  %v200_v10 = vld [vmem:[%s1303_s5 + $0xb8] sm:$0xff]  ;;  %v199_v12 = vld [vmem:[%s1303_s5 + $0xb0] sm:$0xff] }
  0x1f   : > { %v264_v11 = vld [vmem:[%s1303_s5 + $0x2b8] sm:$0xff]  ;;  %v263_v13 = vld [vmem:[%s1303_s5 + $0x2b0] sm:$0xff]  ;;  %v202_v14 = vld [vmem:[%s1303_s5 + $0xc8] sm:$0xff] }
  0x20   : > { %1197 = vmatpush1.bf16.msra.mxu0 %v1196_v23  ;;  %1220 = vmatpush1.bf16.msra.mxu1 %v1196_v23  ;;  %v266_v15 = vld [vmem:[%s1303_s5 + $0x2c8] sm:$0xff]  ;;  %v201_v16 = vld [vmem:[%s1303_s5 + $0xc0] sm:$0xff]  ;;  %v204_v18 = vld [vmem:[%s1303_s5 + $0xd8] sm:$0xff] }
  0x21   : > { %1198 = vmatprep.subr.bf16.mxu0 %v1242_v3  ;;  %1211 = vmatprep.subr.bf16.mxu1 %v1242_v3  ;;  %v265_v17 = vld [vmem:[%s1303_s5 + $0x2c0] sm:$0xff]  ;;  %v268_v19 = vld [vmem:[%s1303_s5 + $0x2d8] sm:$0xff]  ;;  %v203_v20 = vld [vmem:[%s1303_s5 + $0xd0] sm:$0xff] }
  0x22   : > { %v267_v21 = vld [vmem:[%s1303_s5 + $0x2d0] sm:$0xff]  ;;  %v206_v22 = vld [vmem:[%s1303_s5 + $0xe8] sm:$0xff]  ;;  %v205_v24 = vld [vmem:[%s1303_s5 + $0xe0] sm:$0xff] }
  0x23   : > { %v270_v23 = vld [vmem:[%s1303_s5 + $0x2e8] sm:$0xff]  ;;  %v269_v25 = vld [vmem:[%s1303_s5 + $0x2e0] sm:$0xff]  ;;  %v272_v27 = vld [vmem:[%s1303_s5 + $0x2f8] sm:$0xff] }
  0x24   : > { %1200 = vmatpush1.bf16.msra.mxu0 %v1199_v26  ;;  %1221 = vmatpush1.bf16.msra.mxu1 %v1199_v26  ;;  %v208_v26 = vld [vmem:[%s1303_s5 + $0xf8] sm:$0xff]  ;;  %v207_v28 = vld [vmem:[%s1303_s5 + $0xf0] sm:$0xff] }
  0x25   : > { %1201 = vmatprep.subr.bf16.mxu0 %v1242_v3  ;;  %1212 = vmatprep.subr.bf16.mxu1 %v1242_v3  ;;  %v260_v3 = vld [vmem:[%s1303_s5 + $0x298] sm:$0xff] }
  0x28   : > { %1203 = vmatpush1.bf16.msra.mxu0 %v1202_v29  ;;  %1222 = vmatpush1.bf16.msra.mxu1 %v1202_v29  ;;  %v271_v29 = vld [vmem:[%s1303_s5 + $0x2f0] sm:$0xff] }
  0x29   : > { %564 = vmatprep.subr.mxu0 %v1243_v30  ;;  %1213 = vmatprep.subr.mxu1 %v1243_v30  ;;  %v210_v30 = vld [vmem:[%s1303_s5 + $0x108] sm:$0xff] }
  0x2c   : > { %1109 = vmatpush1.msk.msra.mxu0 %vm524_vm1, %v323_v31  ;;  %1223 = vmatpush1.msk.msra.mxu1 %vm524_vm1, %v323_v31  ;;  %v274_v31 = vld [vmem:[%s1303_s5 + $0x308] sm:$0xff] }
  0x2d   : > { %593 = vmatmul.mubr.f32.vlgmr.msra.gmra.mrb[0].mxu0 %v177_v32  ;;  %753 = vmatmul.mubr.f32.vlgmr.msra.gmra.mrb[0].mxu1 %v241_v33  ;;  %v209_v32 = vld [vmem:[%s1303_s5 + $0x100] sm:$0xff] }
  0x2e   : > { %1111 = vmatprep.mubr.msk.f32.mxu0 %vm331_vm0, %v180_v34  ;;  %1143 = vmatprep.mubr.msk.f32.mxu1 %vm331_vm0, %v244_v35  ;;  %v273_v33 = vld [vmem:[%s1303_s5 + $0x300] sm:$0xff]  ;;  %v212_v34 = vld [vmem:[%s1303_s5 + $0x118] sm:$0xff] }
  0x2f   : > { %v276_v35 = vld [vmem:[%s1303_s5 + $0x318] sm:$0xff] }
  0x31   : > { %598 = vmatmul.mubr.f32.gmra.mrb[2].mxu0 %v179_v36  ;;  %758 = vmatmul.mubr.f32.gmra.mrb[2].mxu1 %v243_v37  ;;  %v211_v36 = vld [vmem:[%s1303_s5 + $0x110] sm:$0xff] }
  0x32   : > { %1112 = vmatprep.mubr.msk.f32.mxu0 %vm331_vm0, %v182_v38  ;;  %1144 = vmatprep.mubr.msk.f32.mxu1 %vm331_vm0, %v246_v39  ;;  %v275_v37 = vld [vmem:[%s1303_s5 + $0x310] sm:$0xff]  ;;  %v214_v38 = vld [vmem:[%s1303_s5 + $0x128] sm:$0xff] }
  0x33   : > { %v278_v39 = vld [vmem:[%s1303_s5 + $0x328] sm:$0xff] }
  0x35   : > { %603 = vmatmul.mubr.f32.gmra.mrb[4].mxu0 %v181_v40  ;;  %763 = vmatmul.mubr.f32.gmra.mrb[4].mxu1 %v245_v41  ;;  %v213_v40 = vld [vmem:[%s1303_s5 + $0x120] sm:$0xff] }
  0x36   : > { %1113 = vmatprep.mubr.msk.f32.mxu0 %vm331_vm0, %v184_v42  ;;  %1145 = vmatprep.mubr.msk.f32.mxu1 %vm331_vm0, %v248_v43  ;;  %v277_v41 = vld [vmem:[%s1303_s5 + $0x320] sm:$0xff]  ;;  %v216_v42 = vld [vmem:[%s1303_s5 + $0x138] sm:$0xff] }
  0x37   : > { %v280_v43 = vld [vmem:[%s1303_s5 + $0x338] sm:$0xff] }
  0x39   : > { %608 = vmatmul.mubr.f32.gmra.mrb[6].mxu0 %v183_v44  ;;  %768 = vmatmul.mubr.f32.gmra.mrb[6].mxu1 %v247_v45  ;;  %v215_v44 = vld [vmem:[%s1303_s5 + $0x130] sm:$0xff] }
  0x3a   : > { %1114 = vmatprep.mubr.msk.f32.mxu0 %vm331_vm0, %v186_v46  ;;  %1146 = vmatprep.mubr.msk.f32.mxu1 %vm331_vm0, %v250_v47  ;;  %v279_v45 = vld [vmem:[%s1303_s5 + $0x330] sm:$0xff]  ;;  %v218_v46 = vld [vmem:[%s1303_s5 + $0x148] sm:$0xff] }
  0x3b   : > { %v282_v47 = vld [vmem:[%s1303_s5 + $0x348] sm:$0xff] }
  0x3d   : > { %613 = vmatmul.mubr.f32.gmra.mrb[8].mxu0 %v185_v48  ;;  %773 = vmatmul.mubr.f32.gmra.mrb[8].mxu1 %v249_v49  ;;  %v217_v48 = vld [vmem:[%s1303_s5 + $0x140] sm:$0xff] }
  0x3e   : > { %1115 = vmatprep.mubr.msk.f32.mxu0 %vm331_vm0, %v188_v50  ;;  %1147 = vmatprep.mubr.msk.f32.mxu1 %vm331_vm0, %v252_v51  ;;  %v281_v49 = vld [vmem:[%s1303_s5 + $0x340] sm:$0xff]  ;;  %v220_v50 = vld [vmem:[%s1303_s5 + $0x158] sm:$0xff] }
  0x3f   : > { %v284_v51 = vld [vmem:[%s1303_s5 + $0x358] sm:$0xff] }
  0x41   : > { %618 = vmatmul.mubr.f32.gmra.mrb[10].mxu0 %v187_v52  ;;  %778 = vmatmul.mubr.f32.gmra.mrb[10].mxu1 %v251_v53  ;;  %v219_v52 = vld [vmem:[%s1303_s5 + $0x150] sm:$0xff] }
  0x42   : > { %1116 = vmatprep.mubr.msk.f32.mxu0 %vm331_vm0, %v190_v54  ;;  %1148 = vmatprep.mubr.msk.f32.mxu1 %vm331_vm0, %v254_v55  ;;  %v283_v53 = vld [vmem:[%s1303_s5 + $0x350] sm:$0xff]  ;;  %v222_v54 = vld [vmem:[%s1303_s5 + $0x168] sm:$0xff] }
  0x43   : > { %v286_v55 = vld [vmem:[%s1303_s5 + $0x368] sm:$0xff] }
  0x45   : > { %623 = vmatmul.mubr.f32.gmra.mrb[12].mxu0 %v189_v56  ;;  %783 = vmatmul.mubr.f32.gmra.mrb[12].mxu1 %v253_v57  ;;  %v221_v56 = vld [vmem:[%s1303_s5 + $0x160] sm:$0xff] }
  0x46   : > { %1117 = vmatprep.mubr.msk.f32.mxu0 %vm331_vm0, %v192_v58  ;;  %1149 = vmatprep.mubr.msk.f32.mxu1 %vm331_vm0, %v256_v59  ;;  %v285_v57 = vld [vmem:[%s1303_s5 + $0x360] sm:$0xff]  ;;  %v224_v58 = vld [vmem:[%s1303_s5 + $0x178] sm:$0xff] }
  0x47   : > { %v288_v59 = vld [vmem:[%s1303_s5 + $0x378] sm:$0xff] }
  0x49   : > { %628 = vmatmul.mubr.f32.gmra.mrb[14].mxu0 %v191_v60  ;;  %788 = vmatmul.mubr.f32.gmra.mrb[14].mxu1 %v255_v61  ;;  %v223_v60 = vld [vmem:[%s1303_s5 + $0x170] sm:$0xff] }
  0x4a   : > { %1118 = vmatprep.mubr.msk.f32.mxu0 %vm331_vm0, %v194_v62  ;;  %1150 = vmatprep.mubr.msk.f32.mxu1 %vm331_vm0, %v258_v63  ;;  %v287_v61 = vld [vmem:[%s1303_s5 + $0x370] sm:$0xff]  ;;  %v226_v62 = vld [vmem:[%s1303_s5 + $0x188] sm:$0xff] }
  0x4b   : > { %v290_v63 = vld [vmem:[%s1303_s5 + $0x388] sm:$0xff] }
  0x4d   : > { %633 = vmatmul.mubr.f32.gmra.mrb[16].mxu0 %v193_v0  ;;  %793 = vmatmul.mubr.f32.gmra.mrb[16].mxu1 %v257_v1  ;;  %v225_v0 = vld [vmem:[%s1303_s5 + $0x180] sm:$0xff] }
  0x4e   : > { %1119 = vmatprep.mubr.msk.f32.mxu0 %vm331_vm0, %v196_v2  ;;  %1151 = vmatprep.mubr.msk.f32.mxu1 %vm331_vm0, %v260_v3  ;;  %v289_v1 = vld [vmem:[%s1303_s5 + $0x380] sm:$0xff]  ;;  %v228_v2 = vld [vmem:[%s1303_s5 + $0x198] sm:$0xff] }
  0x4f   : > { %v292_v3 = vld [vmem:[%s1303_s5 + $0x398] sm:$0xff] }
  0x51   : > { %638 = vmatmul.mubr.f32.gmra.mrb[18].mxu0 %v195_v4  ;;  %798 = vmatmul.mubr.f32.gmra.mrb[18].mxu1 %v259_v5  ;;  %v227_v4 = vld [vmem:[%s1303_s5 + $0x190] sm:$0xff] }
  0x52   : > { %1120 = vmatprep.mubr.msk.f32.mxu0 %vm331_vm0, %v198_v6  ;;  %1152 = vmatprep.mubr.msk.f32.mxu1 %vm331_vm0, %v262_v7  ;;  %v291_v5 = vld [vmem:[%s1303_s5 + $0x390] sm:$0xff]  ;;  %v230_v6 = vld [vmem:[%s1303_s5 + $0x1a8] sm:$0xff] }
  0x53   : > { %v294_v7 = vld [vmem:[%s1303_s5 + $0x3a8] sm:$0xff] }
  0x55   : > { %643 = vmatmul.mubr.f32.gmra.mrb[20].mxu0 %v197_v8  ;;  %803 = vmatmul.mubr.f32.gmra.mrb[20].mxu1 %v261_v9  ;;  %v229_v8 = vld [vmem:[%s1303_s5 + $0x1a0] sm:$0xff] }
  0x56   : > { %1121 = vmatprep.mubr.msk.f32.mxu0 %vm331_vm0, %v200_v10  ;;  %1153 = vmatprep.mubr.msk.f32.mxu1 %vm331_vm0, %v264_v11  ;;  %v293_v9 = vld [vmem:[%s1303_s5 + $0x3a0] sm:$0xff]  ;;  %v232_v10 = vld [vmem:[%s1303_s5 + $0x1b8] sm:$0xff] }
  0x57   : > { %v296_v11 = vld [vmem:[%s1303_s5 + $0x3b8] sm:$0xff] }
  0x59   : > { %648 = vmatmul.mubr.f32.gmra.mrb[22].mxu0 %v199_v12  ;;  %808 = vmatmul.mubr.f32.gmra.mrb[22].mxu1 %v263_v13  ;;  %v231_v12 = vld [vmem:[%s1303_s5 + $0x1b0] sm:$0xff] }
  0x5a   : > { %1122 = vmatprep.mubr.msk.f32.mxu0 %vm331_vm0, %v202_v14  ;;  %1154 = vmatprep.mubr.msk.f32.mxu1 %vm331_vm0, %v266_v15  ;;  %v295_v13 = vld [vmem:[%s1303_s5 + $0x3b0] sm:$0xff]  ;;  %v234_v14 = vld [vmem:[%s1303_s5 + $0x1c8] sm:$0xff] }
  0x5b   : > { %v298_v15 = vld [vmem:[%s1303_s5 + $0x3c8] sm:$0xff] }
  0x5d   : > { %653 = vmatmul.mubr.f32.gmra.mrb[24].mxu0 %v201_v16  ;;  %813 = vmatmul.mubr.f32.gmra.mrb[24].mxu1 %v265_v17  ;;  %v233_v16 = vld [vmem:[%s1303_s5 + $0x1c0] sm:$0xff] }
  0x5e   : > { %1123 = vmatprep.mubr.msk.f32.mxu0 %vm331_vm0, %v204_v18  ;;  %1155 = vmatprep.mubr.msk.f32.mxu1 %vm331_vm0, %v268_v19  ;;  %v297_v17 = vld [vmem:[%s1303_s5 + $0x3c0] sm:$0xff]  ;;  %v236_v18 = vld [vmem:[%s1303_s5 + $0x1d8] sm:$0xff] }
  0x5f   : > { %v300_v19 = vld [vmem:[%s1303_s5 + $0x3d8] sm:$0xff] }
  0x61   : > { %658 = vmatmul.mubr.f32.gmra.mrb[26].mxu0 %v203_v20  ;;  %818 = vmatmul.mubr.f32.gmra.mrb[26].mxu1 %v267_v21  ;;  %v235_v20 = vld [vmem:[%s1303_s5 + $0x1d0] sm:$0xff] }
  0x62   : > { %1124 = vmatprep.mubr.msk.f32.mxu0 %vm331_vm0, %v206_v22  ;;  %1156 = vmatprep.mubr.msk.f32.mxu1 %vm331_vm0, %v270_v23  ;;  %v299_v21 = vld [vmem:[%s1303_s5 + $0x3d0] sm:$0xff]  ;;  %v238_v22 = vld [vmem:[%s1303_s5 + $0x1e8] sm:$0xff] }
  0x63   : > { %v302_v23 = vld [vmem:[%s1303_s5 + $0x3e8] sm:$0xff] }
  0x65   : > { %663 = vmatmul.mubr.f32.gmra.mrb[28].mxu0 %v205_v24  ;;  %823 = vmatmul.mubr.f32.gmra.mrb[28].mxu1 %v269_v25  ;;  %v237_v24 = vld [vmem:[%s1303_s5 + $0x1e0] sm:$0xff] }
  0x66   : > { %1125 = vmatprep.mubr.msk.f32.mxu0 %vm331_vm0, %v208_v26  ;;  %1157 = vmatprep.mubr.msk.f32.mxu1 %vm331_vm0, %v272_v27  ;;  %v301_v25 = vld [vmem:[%s1303_s5 + $0x3e0] sm:$0xff]  ;;  %v240_v26 = vld [vmem:[%s1303_s5 + $0x1f8] sm:$0xff] }
  0x67   : > { %v304_v27 = vld [vmem:[%s1303_s5 + $0x3f8] sm:$0xff] }
  0x69   : > { %668 = vmatmul.mubr.f32.gmra.mrb[30].mxu0 %v207_v28  ;;  %828 = vmatmul.mubr.f32.gmra.mrb[30].mxu1 %v271_v29  ;;  %v239_v28 = vld [vmem:[%s1303_s5 + $0x1f0] sm:$0xff] }
  0x6a   : > { %1126 = vmatprep.mubr.msk.f32.mxu0 %vm331_vm0, %v210_v30  ;;  %1158 = vmatprep.mubr.msk.f32.mxu1 %vm331_vm0, %v274_v31  ;;  %v303_v29 = vld [vmem:[%s1303_s5 + $0x3f0] sm:$0xff]  ;;  %v1550_v30 = vld [vmem:[%s1755_s2] ss:$0 sm:$0xff]  ;;  %s1558_s5 = scalar_lea.vmem %s1756_s3, %s1107_s8 }
  0x6d   : > { %673 = vmatmul.mubr.f32.gmra.mrb[32].mxu0 %v209_v32  ;;  %833 = vmatmul.mubr.f32.gmra.mrb[32].mxu1 %v273_v33 }
  0x6e   : > { %1127 = vmatprep.mubr.msk.f32.mxu0 %vm331_vm0, %v212_v34  ;;  %1159 = vmatprep.mubr.msk.f32.mxu1 %vm331_vm0, %v276_v35 }
  0x71   : > { %678 = vmatmul.mubr.f32.gmra.mrb[34].mxu0 %v211_v36  ;;  %838 = vmatmul.mubr.f32.gmra.mrb[34].mxu1 %v275_v37 }
  0x72   : > { %1128 = vmatprep.mubr.msk.f32.mxu0 %vm331_vm0, %v214_v38  ;;  %1160 = vmatprep.mubr.msk.f32.mxu1 %vm331_vm0, %v278_v39 }
  0x75   : > { %683 = vmatmul.mubr.f32.gmra.mrb[36].mxu0 %v213_v40  ;;  %843 = vmatmul.mubr.f32.gmra.mrb[36].mxu1 %v277_v41 }
  0x76   : > { %1129 = vmatprep.mubr.msk.f32.mxu0 %vm331_vm0, %v216_v42  ;;  %1161 = vmatprep.mubr.msk.f32.mxu1 %vm331_vm0, %v280_v43 }
  0x79   : > { %688 = vmatmul.mubr.f32.gmra.mrb[38].mxu0 %v215_v44  ;;  %848 = vmatmul.mubr.f32.gmra.mrb[38].mxu1 %v279_v45 }
  0x7a   : > { %1130 = vmatprep.mubr.msk.f32.mxu0 %vm331_vm0, %v218_v46  ;;  %1162 = vmatprep.mubr.msk.f32.mxu1 %vm331_vm0, %v282_v47 }
  0x7d   : > { %693 = vmatmul.mubr.f32.gmra.mrb[40].mxu0 %v217_v48  ;;  %853 = vmatmul.mubr.f32.gmra.mrb[40].mxu1 %v281_v49 }
  0x7e   : > { %1131 = vmatprep.mubr.msk.f32.mxu0 %vm331_vm0, %v220_v50  ;;  %1163 = vmatprep.mubr.msk.f32.mxu1 %vm331_vm0, %v284_v51 }
  0x81   : > { %698 = vmatmul.mubr.f32.gmra.mrb[42].mxu0 %v219_v52  ;;  %858 = vmatmul.mubr.f32.gmra.mrb[42].mxu1 %v283_v53 }
  0x82   : > { %1132 = vmatprep.mubr.msk.f32.mxu0 %vm331_vm0, %v222_v54  ;;  %1164 = vmatprep.mubr.msk.f32.mxu1 %vm331_vm0, %v286_v55 }
  0x85   : > { %703 = vmatmul.mubr.f32.gmra.mrb[44].mxu0 %v221_v56  ;;  %863 = vmatmul.mubr.f32.gmra.mrb[44].mxu1 %v285_v57 }
  0x86   : > { %1133 = vmatprep.mubr.msk.f32.mxu0 %vm331_vm0, %v224_v58  ;;  %1165 = vmatprep.mubr.msk.f32.mxu1 %vm331_vm0, %v288_v59 }
  0x89   : > { %708 = vmatmul.mubr.f32.gmra.mrb[46].mxu0 %v223_v60  ;;  %868 = vmatmul.mubr.f32.gmra.mrb[46].mxu1 %v287_v61 }
  0x8a   : > { %1134 = vmatprep.mubr.msk.f32.mxu0 %vm331_vm0, %v226_v62  ;;  %1166 = vmatprep.mubr.msk.f32.mxu1 %vm331_vm0, %v290_v63 }
  0x8d   : > { %713 = vmatmul.mubr.f32.gmra.mrb[48].mxu0 %v225_v0  ;;  %873 = vmatmul.mubr.f32.gmra.mrb[48].mxu1 %v289_v1 }
  0x8e   : > { %1135 = vmatprep.mubr.msk.f32.mxu0 %vm331_vm0, %v228_v2  ;;  %1167 = vmatprep.mubr.msk.f32.mxu1 %vm331_vm0, %v292_v3 }
  0x91   : > { %718 = vmatmul.mubr.f32.gmra.mrb[50].mxu0 %v227_v4  ;;  %878 = vmatmul.mubr.f32.gmra.mrb[50].mxu1 %v291_v5 }
  0x92   : > { %1136 = vmatprep.mubr.msk.f32.mxu0 %vm331_vm0, %v230_v6  ;;  %1168 = vmatprep.mubr.msk.f32.mxu1 %vm331_vm0, %v294_v7 }
  0x95   : > { %723 = vmatmul.mubr.f32.gmra.mrb[52].mxu0 %v229_v8  ;;  %883 = vmatmul.mubr.f32.gmra.mrb[52].mxu1 %v293_v9 }
  0x96   : > { %1137 = vmatprep.mubr.msk.f32.mxu0 %vm331_vm0, %v232_v10  ;;  %1169 = vmatprep.mubr.msk.f32.mxu1 %vm331_vm0, %v296_v11 }
  0x99   : > { %728 = vmatmul.mubr.f32.gmra.mrb[54].mxu0 %v231_v12  ;;  %888 = vmatmul.mubr.f32.gmra.mrb[54].mxu1 %v295_v13 }
  0x9a   : > { %1138 = vmatprep.mubr.msk.f32.mxu0 %vm331_vm0, %v234_v14  ;;  %1170 = vmatprep.mubr.msk.f32.mxu1 %vm331_vm0, %v298_v15 }
  0x9d   : > { %733 = vmatmul.mubr.f32.gmra.mrb[56].mxu0 %v233_v16  ;;  %893 = vmatmul.mubr.f32.gmra.mrb[56].mxu1 %v297_v17 }
  0x9e   : > { %1139 = vmatprep.mubr.msk.f32.mxu0 %vm331_vm0, %v236_v18  ;;  %1171 = vmatprep.mubr.msk.f32.mxu1 %vm331_vm0, %v300_v19 }
  0xa1   : > { %738 = vmatmul.mubr.f32.gmra.mrb[58].mxu0 %v235_v20  ;;  %898 = vmatmul.mubr.f32.gmra.mrb[58].mxu1 %v299_v21 }
  0xa2   : > { %1140 = vmatprep.mubr.msk.f32.mxu0 %vm331_vm0, %v238_v22  ;;  %1172 = vmatprep.mubr.msk.f32.mxu1 %vm331_vm0, %v302_v23 }
  0xa5   : > { %743 = vmatmul.mubr.f32.gmra.mrb[60].mxu0 %v237_v24  ;;  %903 = vmatmul.mubr.f32.gmra.mrb[60].mxu1 %v301_v25 }
  0xa6   : > { %1141 = vmatprep.mubr.msk.f32.mxu0 %vm331_vm0, %v240_v26  ;;  %1173 = vmatprep.mubr.msk.f32.mxu1 %vm331_vm0, %v304_v27 }
  0xa9   : > { %748 = vmatmul.mubr.f32.gmra.mrb[62].mxu0 %v239_v28  ;;  %908 = vmatmul.mubr.f32.gmra.mrb[62].mxu1 %v303_v29 }
 0x100   : > { %v594_v31 = vpop.f32.mrb[0].mxu0  ;;  %v754_v32 = vpop.f32.mrb[0].mxu1 }
 0x101   : > { %v595_v33 = vadd.f32 %v1550_v30, %v594_v31  ;;  %v755_v34 = vadd.f32 %v1550_v30, %v754_v32  ;;  %v596_v35 = vpop.f32.mrb[1].mxu0  ;;  %v756_v36 = vpop.f32.mrb[1].mxu1 }
 0x103   : > { %v913_v37 = vmax.f32 %v595_v33, 0.0  ;;  %v945_v38 = vmax.f32 %v755_v34, 0.0 }
 0x104   : > { %v599_v39 = vpop.f32.mrb[2].mxu0  ;;  %v759_v40 = vpop.f32.mrb[2].mxu1 }
 0x105   : > { %978 = vst.msk [vmem:[%s1558_s5] sm:$0xff] %vm977_vm2, %v913_v37  ;;  %1010 = vst.msk [vmem:[%s1558_s5 + $0x100] sm:$0xff] %vm977_vm2, %v945_v38  ;;  %v600_v41 = vadd.f32 %v1550_v30, %v599_v39  ;;  %v760_v42 = vadd.f32 %v1550_v30, %v759_v40  ;;  %v601_v43 = vpop.f32.mrb[3].mxu0  ;;  %v761_v44 = vpop.f32.mrb[3].mxu1 }
 0x107   : > { %v914_v45 = vmax.f32 %v600_v41, 0.0  ;;  %v946_v46 = vmax.f32 %v760_v42, 0.0 }
 0x108   : > { %v604_v47 = vpop.f32.mrb[4].mxu0  ;;  %v764_v48 = vpop.f32.mrb[4].mxu1 }
 0x109   : > { %979 = vst.msk [vmem:[%s1558_s5 + $0x8] sm:$0xff] %vm977_vm2, %v914_v45  ;;  %1011 = vst.msk [vmem:[%s1558_s5 + $0x108] sm:$0xff] %vm977_vm2, %v946_v46  ;;  %v605_v49 = vadd.f32 %v1550_v30, %v604_v47  ;;  %v765_v50 = vadd.f32 %v1550_v30, %v764_v48  ;;  %v606_v51 = vpop.f32.mrb[5].mxu0  ;;  %v766_v52 = vpop.f32.mrb[5].mxu1 }
 0x10b   : > { %v915_v53 = vmax.f32 %v605_v49, 0.0  ;;  %v947_v54 = vmax.f32 %v765_v50, 0.0 }
 0x10c   : > { %v609_v55 = vpop.f32.mrb[6].mxu0  ;;  %v769_v56 = vpop.f32.mrb[6].mxu1 }
 0x10d   : > { %980 = vst.msk [vmem:[%s1558_s5 + $0x10] sm:$0xff] %vm977_vm2, %v915_v53  ;;  %1012 = vst.msk [vmem:[%s1558_s5 + $0x110] sm:$0xff] %vm977_vm2, %v947_v54  ;;  %v610_v57 = vadd.f32 %v1550_v30, %v609_v55  ;;  %v770_v58 = vadd.f32 %v1550_v30, %v769_v56  ;;  %v611_v59 = vpop.f32.mrb[7].mxu0  ;;  %v771_v60 = vpop.f32.mrb[7].mxu1 }
 0x10f   : > { %v916_v61 = vmax.f32 %v610_v57, 0.0  ;;  %v948_v62 = vmax.f32 %v770_v58, 0.0 }
 0x110   : > { %v614_v63 = vpop.f32.mrb[8].mxu0  ;;  %v774_v0 = vpop.f32.mrb[8].mxu1 }
 0x111   : > { %981 = vst.msk [vmem:[%s1558_s5 + $0x18] sm:$0xff] %vm977_vm2, %v916_v61  ;;  %1013 = vst.msk [vmem:[%s1558_s5 + $0x118] sm:$0xff] %vm977_vm2, %v948_v62  ;;  %v615_v1 = vadd.f32 %v1550_v30, %v614_v63  ;;  %v775_v2 = vadd.f32 %v1550_v30, %v774_v0  ;;  %v616_v3 = vpop.f32.mrb[9].mxu0  ;;  %v776_v4 = vpop.f32.mrb[9].mxu1 }
 0x113   : > { %v917_v5 = vmax.f32 %v615_v1, 0.0  ;;  %v949_v6 = vmax.f32 %v775_v2, 0.0 }
 0x114   : > { %v619_v7 = vpop.f32.mrb[10].mxu0  ;;  %v779_v8 = vpop.f32.mrb[10].mxu1 }
 0x115   : > { %982 = vst.msk [vmem:[%s1558_s5 + $0x20] sm:$0xff] %vm977_vm2, %v917_v5  ;;  %1014 = vst.msk [vmem:[%s1558_s5 + $0x120] sm:$0xff] %vm977_vm2, %v949_v6  ;;  %v620_v9 = vadd.f32 %v1550_v30, %v619_v7  ;;  %v780_v10 = vadd.f32 %v1550_v30, %v779_v8  ;;  %v621_v11 = vpop.f32.mrb[11].mxu0  ;;  %v781_v12 = vpop.f32.mrb[11].mxu1 }
 0x117   : > { %v918_v13 = vmax.f32 %v620_v9, 0.0  ;;  %v950_v14 = vmax.f32 %v780_v10, 0.0 }
 0x118   : > { %v624_v15 = vpop.f32.mrb[12].mxu0  ;;  %v784_v16 = vpop.f32.mrb[12].mxu1 }
 0x119   : > { %983 = vst.msk [vmem:[%s1558_s5 + $0x28] sm:$0xff] %vm977_vm2, %v918_v13  ;;  %1015 = vst.msk [vmem:[%s1558_s5 + $0x128] sm:$0xff] %vm977_vm2, %v950_v14  ;;  %v625_v17 = vadd.f32 %v1550_v30, %v624_v15  ;;  %v785_v18 = vadd.f32 %v1550_v30, %v784_v16  ;;  %v626_v19 = vpop.f32.mrb[13].mxu0  ;;  %v786_v20 = vpop.f32.mrb[13].mxu1 }
 0x11b   : > { %v919_v21 = vmax.f32 %v625_v17, 0.0  ;;  %v951_v22 = vmax.f32 %v785_v18, 0.0 }
 0x11c   : > { %v629_v23 = vpop.f32.mrb[14].mxu0  ;;  %v789_v24 = vpop.f32.mrb[14].mxu1 }
 0x11d   : > { %984 = vst.msk [vmem:[%s1558_s5 + $0x30] sm:$0xff] %vm977_vm2, %v919_v21  ;;  %1016 = vst.msk [vmem:[%s1558_s5 + $0x130] sm:$0xff] %vm977_vm2, %v951_v22  ;;  %v630_v25 = vadd.f32 %v1550_v30, %v629_v23  ;;  %v790_v26 = vadd.f32 %v1550_v30, %v789_v24  ;;  %v631_v27 = vpop.f32.mrb[15].mxu0  ;;  %v791_v28 = vpop.f32.mrb[15].mxu1 }
 0x11f   : > { %v920_v29 = vmax.f32 %v630_v25, 0.0  ;;  %v952_v31 = vmax.f32 %v790_v26, 0.0 }
 0x120   : > { %v634_v32 = vpop.f32.mrb[16].mxu0  ;;  %v794_v33 = vpop.f32.mrb[16].mxu1 }
 0x121   : > { %985 = vst.msk [vmem:[%s1558_s5 + $0x38] sm:$0xff] %vm977_vm2, %v920_v29  ;;  %1017 = vst.msk [vmem:[%s1558_s5 + $0x138] sm:$0xff] %vm977_vm2, %v952_v31  ;;  %v635_v34 = vadd.f32 %v1550_v30, %v634_v32  ;;  %v795_v35 = vadd.f32 %v1550_v30, %v794_v33  ;;  %v636_v36 = vpop.f32.mrb[17].mxu0  ;;  %v796_v37 = vpop.f32.mrb[17].mxu1 }
 0x123   : > { %v921_v38 = vmax.f32 %v635_v34, 0.0  ;;  %v953_v39 = vmax.f32 %v795_v35, 0.0 }
 0x124   : > { %v639_v40 = vpop.f32.mrb[18].mxu0  ;;  %v799_v41 = vpop.f32.mrb[18].mxu1 }
 0x125   : > { %986 = vst.msk [vmem:[%s1558_s5 + $0x40] sm:$0xff] %vm977_vm2, %v921_v38  ;;  %1018 = vst.msk [vmem:[%s1558_s5 + $0x140] sm:$0xff] %vm977_vm2, %v953_v39  ;;  %v640_v42 = vadd.f32 %v1550_v30, %v639_v40  ;;  %v800_v43 = vadd.f32 %v1550_v30, %v799_v41  ;;  %v641_v44 = vpop.f32.mrb[19].mxu0  ;;  %v801_v45 = vpop.f32.mrb[19].mxu1 }
 0x127   : > { %v922_v46 = vmax.f32 %v640_v42, 0.0  ;;  %v954_v47 = vmax.f32 %v800_v43, 0.0 }
 0x128   : > { %v644_v48 = vpop.f32.mrb[20].mxu0  ;;  %v804_v49 = vpop.f32.mrb[20].mxu1 }
 0x129   : > { %987 = vst.msk [vmem:[%s1558_s5 + $0x48] sm:$0xff] %vm977_vm2, %v922_v46  ;;  %1019 = vst.msk [vmem:[%s1558_s5 + $0x148] sm:$0xff] %vm977_vm2, %v954_v47  ;;  %v645_v50 = vadd.f32 %v1550_v30, %v644_v48  ;;  %v805_v51 = vadd.f32 %v1550_v30, %v804_v49  ;;  %v646_v52 = vpop.f32.mrb[21].mxu0  ;;  %v806_v53 = vpop.f32.mrb[21].mxu1 }
 0x12b   : > { %v923_v54 = vmax.f32 %v645_v50, 0.0  ;;  %v955_v55 = vmax.f32 %v805_v51, 0.0 }
 0x12c   : > { %v649_v56 = vpop.f32.mrb[22].mxu0  ;;  %v809_v57 = vpop.f32.mrb[22].mxu1 }
 0x12d   : > { %988 = vst.msk [vmem:[%s1558_s5 + $0x50] sm:$0xff] %vm977_vm2, %v923_v54  ;;  %1020 = vst.msk [vmem:[%s1558_s5 + $0x150] sm:$0xff] %vm977_vm2, %v955_v55  ;;  %v650_v58 = vadd.f32 %v1550_v30, %v649_v56  ;;  %v810_v59 = vadd.f32 %v1550_v30, %v809_v57  ;;  %v651_v60 = vpop.f32.mrb[23].mxu0  ;;  %v811_v61 = vpop.f32.mrb[23].mxu1 }
 0x12f   : > { %v924_v62 = vmax.f32 %v650_v58, 0.0  ;;  %v956_v63 = vmax.f32 %v810_v59, 0.0 }
 0x130   : > { %v654_v0 = vpop.f32.mrb[24].mxu0  ;;  %v814_v1 = vpop.f32.mrb[24].mxu1 }
 0x131   : > { %989 = vst.msk [vmem:[%s1558_s5 + $0x58] sm:$0xff] %vm977_vm2, %v924_v62  ;;  %1021 = vst.msk [vmem:[%s1558_s5 + $0x158] sm:$0xff] %vm977_vm2, %v956_v63  ;;  %v655_v2 = vadd.f32 %v1550_v30, %v654_v0  ;;  %v815_v3 = vadd.f32 %v1550_v30, %v814_v1  ;;  %v656_v4 = vpop.f32.mrb[25].mxu0  ;;  %v816_v5 = vpop.f32.mrb[25].mxu1 }
 0x133   : > { %v925_v6 = vmax.f32 %v655_v2, 0.0  ;;  %v957_v7 = vmax.f32 %v815_v3, 0.0 }
 0x134   : > { %v659_v8 = vpop.f32.mrb[26].mxu0  ;;  %v819_v9 = vpop.f32.mrb[26].mxu1 }
 0x135   : > { %990 = vst.msk [vmem:[%s1558_s5 + $0x60] sm:$0xff] %vm977_vm2, %v925_v6  ;;  %1022 = vst.msk [vmem:[%s1558_s5 + $0x160] sm:$0xff] %vm977_vm2, %v957_v7  ;;  %v660_v10 = vadd.f32 %v1550_v30, %v659_v8  ;;  %v820_v11 = vadd.f32 %v1550_v30, %v819_v9  ;;  %v661_v12 = vpop.f32.mrb[27].mxu0  ;;  %v821_v13 = vpop.f32.mrb[27].mxu1 }
 0x137   : > { %v926_v14 = vmax.f32 %v660_v10, 0.0  ;;  %v958_v15 = vmax.f32 %v820_v11, 0.0 }
 0x138   : > { %v664_v16 = vpop.f32.mrb[28].mxu0  ;;  %v824_v17 = vpop.f32.mrb[28].mxu1 }
 0x139   : > { %991 = vst.msk [vmem:[%s1558_s5 + $0x68] sm:$0xff] %vm977_vm2, %v926_v14  ;;  %1023 = vst.msk [vmem:[%s1558_s5 + $0x168] sm:$0xff] %vm977_vm2, %v958_v15  ;;  %v665_v18 = vadd.f32 %v1550_v30, %v664_v16  ;;  %v825_v19 = vadd.f32 %v1550_v30, %v824_v17  ;;  %v666_v20 = vpop.f32.mrb[29].mxu0  ;;  %v826_v21 = vpop.f32.mrb[29].mxu1 }
 0x13b   : > { %v927_v22 = vmax.f32 %v665_v18, 0.0  ;;  %v959_v23 = vmax.f32 %v825_v19, 0.0 }
 0x13c   : > { %v669_v24 = vpop.f32.mrb[30].mxu0  ;;  %v829_v25 = vpop.f32.mrb[30].mxu1 }
 0x13d   : > { %992 = vst.msk [vmem:[%s1558_s5 + $0x70] sm:$0xff] %vm977_vm2, %v927_v22  ;;  %1024 = vst.msk [vmem:[%s1558_s5 + $0x170] sm:$0xff] %vm977_vm2, %v959_v23  ;;  %v670_v26 = vadd.f32 %v1550_v30, %v669_v24  ;;  %v830_v27 = vadd.f32 %v1550_v30, %v829_v25  ;;  %v671_v28 = vpop.f32.mrb[31].mxu0  ;;  %v831_v29 = vpop.f32.mrb[31].mxu1 }
 0x13f   : > { %v928_v31 = vmax.f32 %v670_v26, 0.0  ;;  %v960_v32 = vmax.f32 %v830_v27, 0.0 }
 0x140   : > { %v674_v33 = vpop.f32.mrb[32].mxu0  ;;  %v834_v34 = vpop.f32.mrb[32].mxu1 }
 0x141   : > { %993 = vst.msk [vmem:[%s1558_s5 + $0x78] sm:$0xff] %vm977_vm2, %v928_v31  ;;  %1025 = vst.msk [vmem:[%s1558_s5 + $0x178] sm:$0xff] %vm977_vm2, %v960_v32  ;;  %v675_v35 = vadd.f32 %v1550_v30, %v674_v33  ;;  %v835_v36 = vadd.f32 %v1550_v30, %v834_v34  ;;  %v676_v37 = vpop.f32.mrb[33].mxu0  ;;  %v836_v38 = vpop.f32.mrb[33].mxu1 }
 0x143   : > { %v929_v39 = vmax.f32 %v675_v35, 0.0  ;;  %v961_v40 = vmax.f32 %v835_v36, 0.0 }
 0x144   : > { %v679_v41 = vpop.f32.mrb[34].mxu0  ;;  %v839_v42 = vpop.f32.mrb[34].mxu1 }
 0x145   : > { %994 = vst.msk [vmem:[%s1558_s5 + $0x80] sm:$0xff] %vm977_vm2, %v929_v39  ;;  %1026 = vst.msk [vmem:[%s1558_s5 + $0x180] sm:$0xff] %vm977_vm2, %v961_v40  ;;  %v680_v43 = vadd.f32 %v1550_v30, %v679_v41  ;;  %v840_v44 = vadd.f32 %v1550_v30, %v839_v42  ;;  %v681_v45 = vpop.f32.mrb[35].mxu0  ;;  %v841_v46 = vpop.f32.mrb[35].mxu1 }
 0x147   : > { %v930_v47 = vmax.f32 %v680_v43, 0.0  ;;  %v962_v48 = vmax.f32 %v840_v44, 0.0 }
 0x148   : > { %v684_v49 = vpop.f32.mrb[36].mxu0  ;;  %v844_v50 = vpop.f32.mrb[36].mxu1 }
 0x149   : > { %995 = vst.msk [vmem:[%s1558_s5 + $0x88] sm:$0xff] %vm977_vm2, %v930_v47  ;;  %1027 = vst.msk [vmem:[%s1558_s5 + $0x188] sm:$0xff] %vm977_vm2, %v962_v48  ;;  %v685_v51 = vadd.f32 %v1550_v30, %v684_v49  ;;  %v845_v52 = vadd.f32 %v1550_v30, %v844_v50  ;;  %v686_v53 = vpop.f32.mrb[37].mxu0  ;;  %v846_v54 = vpop.f32.mrb[37].mxu1 }
 0x14b   : > { %v931_v55 = vmax.f32 %v685_v51, 0.0  ;;  %v963_v56 = vmax.f32 %v845_v52, 0.0 }
 0x14c   : > { %v689_v57 = vpop.f32.mrb[38].mxu0  ;;  %v849_v58 = vpop.f32.mrb[38].mxu1 }
 0x14d   : > { %996 = vst.msk [vmem:[%s1558_s5 + $0x90] sm:$0xff] %vm977_vm2, %v931_v55  ;;  %1028 = vst.msk [vmem:[%s1558_s5 + $0x190] sm:$0xff] %vm977_vm2, %v963_v56  ;;  %v690_v59 = vadd.f32 %v1550_v30, %v689_v57  ;;  %v850_v60 = vadd.f32 %v1550_v30, %v849_v58  ;;  %v691_v61 = vpop.f32.mrb[39].mxu0  ;;  %v851_v62 = vpop.f32.mrb[39].mxu1 }
 0x14f   : > { %v932_v63 = vmax.f32 %v690_v59, 0.0  ;;  %v964_v0 = vmax.f32 %v850_v60, 0.0 }
 0x150   : > { %v694_v1 = vpop.f32.mrb[40].mxu0  ;;  %v854_v2 = vpop.f32.mrb[40].mxu1 }
 0x151   : > { %997 = vst.msk [vmem:[%s1558_s5 + $0x98] sm:$0xff] %vm977_vm2, %v932_v63  ;;  %1029 = vst.msk [vmem:[%s1558_s5 + $0x198] sm:$0xff] %vm977_vm2, %v964_v0  ;;  %v695_v3 = vadd.f32 %v1550_v30, %v694_v1  ;;  %v855_v4 = vadd.f32 %v1550_v30, %v854_v2  ;;  %v696_v5 = vpop.f32.mrb[41].mxu0  ;;  %v856_v6 = vpop.f32.mrb[41].mxu1 }
 0x153   : > { %v933_v7 = vmax.f32 %v695_v3, 0.0  ;;  %v965_v8 = vmax.f32 %v855_v4, 0.0 }
 0x154   : > { %v699_v9 = vpop.f32.mrb[42].mxu0  ;;  %v859_v10 = vpop.f32.mrb[42].mxu1 }
 0x155   : > { %998 = vst.msk [vmem:[%s1558_s5 + $0xa0] sm:$0xff] %vm977_vm2, %v933_v7  ;;  %1030 = vst.msk [vmem:[%s1558_s5 + $0x1a0] sm:$0xff] %vm977_vm2, %v965_v8  ;;  %v700_v11 = vadd.f32 %v1550_v30, %v699_v9  ;;  %v860_v12 = vadd.f32 %v1550_v30, %v859_v10  ;;  %v701_v13 = vpop.f32.mrb[43].mxu0  ;;  %v861_v14 = vpop.f32.mrb[43].mxu1 }
 0x157   : > { %v934_v15 = vmax.f32 %v700_v11, 0.0  ;;  %v966_v16 = vmax.f32 %v860_v12, 0.0 }
 0x158   : > { %v704_v17 = vpop.f32.mrb[44].mxu0  ;;  %v864_v18 = vpop.f32.mrb[44].mxu1 }
 0x159   : > { %999 = vst.msk [vmem:[%s1558_s5 + $0xa8] sm:$0xff] %vm977_vm2, %v934_v15  ;;  %1031 = vst.msk [vmem:[%s1558_s5 + $0x1a8] sm:$0xff] %vm977_vm2, %v966_v16  ;;  %v705_v19 = vadd.f32 %v1550_v30, %v704_v17  ;;  %v865_v20 = vadd.f32 %v1550_v30, %v864_v18  ;;  %v706_v21 = vpop.f32.mrb[45].mxu0  ;;  %v866_v22 = vpop.f32.mrb[45].mxu1 }
 0x15b   : > { %v935_v23 = vmax.f32 %v705_v19, 0.0  ;;  %v967_v24 = vmax.f32 %v865_v20, 0.0 }
 0x15c   : > { %v709_v25 = vpop.f32.mrb[46].mxu0  ;;  %v869_v26 = vpop.f32.mrb[46].mxu1 }
 0x15d   : > { %1000 = vst.msk [vmem:[%s1558_s5 + $0xb0] sm:$0xff] %vm977_vm2, %v935_v23  ;;  %1032 = vst.msk [vmem:[%s1558_s5 + $0x1b0] sm:$0xff] %vm977_vm2, %v967_v24  ;;  %v710_v27 = vadd.f32 %v1550_v30, %v709_v25  ;;  %v870_v28 = vadd.f32 %v1550_v30, %v869_v26  ;;  %v711_v29 = vpop.f32.mrb[47].mxu0  ;;  %v871_v31 = vpop.f32.mrb[47].mxu1 }
 0x15f   : > { %v936_v32 = vmax.f32 %v710_v27, 0.0  ;;  %v968_v33 = vmax.f32 %v870_v28, 0.0 }
 0x160   : > { %v714_v34 = vpop.f32.mrb[48].mxu0  ;;  %v874_v35 = vpop.f32.mrb[48].mxu1 }
 0x161   : > { %1001 = vst.msk [vmem:[%s1558_s5 + $0xb8] sm:$0xff] %vm977_vm2, %v936_v32  ;;  %1033 = vst.msk [vmem:[%s1558_s5 + $0x1b8] sm:$0xff] %vm977_vm2, %v968_v33  ;;  %v715_v36 = vadd.f32 %v1550_v30, %v714_v34  ;;  %v875_v37 = vadd.f32 %v1550_v30, %v874_v35  ;;  %v716_v38 = vpop.f32.mrb[49].mxu0  ;;  %v876_v39 = vpop.f32.mrb[49].mxu1 }
 0x163   : > { %v937_v40 = vmax.f32 %v715_v36, 0.0  ;;  %v969_v41 = vmax.f32 %v875_v37, 0.0 }
 0x164   : > { %v719_v42 = vpop.f32.mrb[50].mxu0  ;;  %v879_v43 = vpop.f32.mrb[50].mxu1 }
 0x165   : > { %1002 = vst.msk [vmem:[%s1558_s5 + $0xc0] sm:$0xff] %vm977_vm2, %v937_v40  ;;  %1034 = vst.msk [vmem:[%s1558_s5 + $0x1c0] sm:$0xff] %vm977_vm2, %v969_v41  ;;  %v720_v44 = vadd.f32 %v1550_v30, %v719_v42  ;;  %v880_v45 = vadd.f32 %v1550_v30, %v879_v43  ;;  %v721_v46 = vpop.f32.mrb[51].mxu0  ;;  %v881_v47 = vpop.f32.mrb[51].mxu1 }
 0x167   : > { %v938_v48 = vmax.f32 %v720_v44, 0.0  ;;  %v970_v49 = vmax.f32 %v880_v45, 0.0 }
 0x168   : > { %v724_v50 = vpop.f32.mrb[52].mxu0  ;;  %v884_v51 = vpop.f32.mrb[52].mxu1 }
 0x169   : > { %1003 = vst.msk [vmem:[%s1558_s5 + $0xc8] sm:$0xff] %vm977_vm2, %v938_v48  ;;  %1035 = vst.msk [vmem:[%s1558_s5 + $0x1c8] sm:$0xff] %vm977_vm2, %v970_v49  ;;  %v725_v52 = vadd.f32 %v1550_v30, %v724_v50  ;;  %v885_v53 = vadd.f32 %v1550_v30, %v884_v51  ;;  %v726_v54 = vpop.f32.mrb[53].mxu0  ;;  %v886_v55 = vpop.f32.mrb[53].mxu1 }
 0x16b   : > { %v939_v56 = vmax.f32 %v725_v52, 0.0  ;;  %v971_v57 = vmax.f32 %v885_v53, 0.0 }
 0x16c   : > { %v729_v58 = vpop.f32.mrb[54].mxu0  ;;  %v889_v59 = vpop.f32.mrb[54].mxu1 }
 0x16d   : > { %1004 = vst.msk [vmem:[%s1558_s5 + $0xd0] sm:$0xff] %vm977_vm2, %v939_v56  ;;  %1036 = vst.msk [vmem:[%s1558_s5 + $0x1d0] sm:$0xff] %vm977_vm2, %v971_v57  ;;  %v730_v60 = vadd.f32 %v1550_v30, %v729_v58  ;;  %v890_v61 = vadd.f32 %v1550_v30, %v889_v59  ;;  %v731_v62 = vpop.f32.mrb[55].mxu0  ;;  %v891_v63 = vpop.f32.mrb[55].mxu1 }
 0x16f   : > { %v940_v0 = vmax.f32 %v730_v60, 0.0  ;;  %v972_v1 = vmax.f32 %v890_v61, 0.0 }
 0x170   : > { %v734_v2 = vpop.f32.mrb[56].mxu0  ;;  %v894_v3 = vpop.f32.mrb[56].mxu1 }
 0x171   : > { %1005 = vst.msk [vmem:[%s1558_s5 + $0xd8] sm:$0xff] %vm977_vm2, %v940_v0  ;;  %1037 = vst.msk [vmem:[%s1558_s5 + $0x1d8] sm:$0xff] %vm977_vm2, %v972_v1  ;;  %v735_v4 = vadd.f32 %v1550_v30, %v734_v2  ;;  %v895_v5 = vadd.f32 %v1550_v30, %v894_v3  ;;  %v736_v6 = vpop.f32.mrb[57].mxu0  ;;  %v896_v7 = vpop.f32.mrb[57].mxu1 }
 0x173   : > { %v941_v8 = vmax.f32 %v735_v4, 0.0  ;;  %v973_v9 = vmax.f32 %v895_v5, 0.0 }
 0x174   : > { %v739_v10 = vpop.f32.mrb[58].mxu0  ;;  %v899_v11 = vpop.f32.mrb[58].mxu1 }
 0x175   : > { %1006 = vst.msk [vmem:[%s1558_s5 + $0xe0] sm:$0xff] %vm977_vm2, %v941_v8  ;;  %1038 = vst.msk [vmem:[%s1558_s5 + $0x1e0] sm:$0xff] %vm977_vm2, %v973_v9  ;;  %v740_v12 = vadd.f32 %v1550_v30, %v739_v10  ;;  %v900_v13 = vadd.f32 %v1550_v30, %v899_v11  ;;  %v741_v14 = vpop.f32.mrb[59].mxu0  ;;  %v901_v15 = vpop.f32.mrb[59].mxu1 }
 0x177   : > { %v942_v16 = vmax.f32 %v740_v12, 0.0  ;;  %v974_v17 = vmax.f32 %v900_v13, 0.0 }
 0x178   : > { %v744_v18 = vpop.f32.mrb[60].mxu0  ;;  %v904_v19 = vpop.f32.mrb[60].mxu1 }
 0x179   : > { %1007 = vst.msk [vmem:[%s1558_s5 + $0xe8] sm:$0xff] %vm977_vm2, %v942_v16  ;;  %1039 = vst.msk [vmem:[%s1558_s5 + $0x1e8] sm:$0xff] %vm977_vm2, %v974_v17  ;;  %v745_v20 = vadd.f32 %v1550_v30, %v744_v18  ;;  %v905_v21 = vadd.f32 %v1550_v30, %v904_v19  ;;  %v746_v22 = vpop.f32.mrb[61].mxu0  ;;  %v906_v23 = vpop.f32.mrb[61].mxu1 }
 0x17b   : > { %v943_v24 = vmax.f32 %v745_v20, 0.0  ;;  %v975_v25 = vmax.f32 %v905_v21, 0.0 }
 0x17c   : > { %v749_v26 = vpop.f32.mrb[62].mxu0  ;;  %v909_v27 = vpop.f32.mrb[62].mxu1 }
 0x17d   : > { %1008 = vst.msk [vmem:[%s1558_s5 + $0xf0] sm:$0xff] %vm977_vm2, %v943_v24  ;;  %1040 = vst.msk [vmem:[%s1558_s5 + $0x1f0] sm:$0xff] %vm977_vm2, %v975_v25  ;;  %v750_v28 = vadd.f32 %v1550_v30, %v749_v26  ;;  %v910_v29 = vadd.f32 %v1550_v30, %v909_v27  ;;  %v751_v31 = vpop.f32.mrb[63].mxu0  ;;  %v911_v32 = vpop.f32.mrb[63].mxu1 }
 0x17f   : > { %v944_v33 = vmax.f32 %v750_v28, 0.0  ;;  %v976_v34 = vmax.f32 %v910_v29, 0.0 }
 0x181   : > { %1009 = vst.msk [vmem:[%s1558_s5 + $0xf8] sm:$0xff] %vm977_vm2, %v944_v33  ;;  %1041 = vst.msk [vmem:[%s1558_s5 + $0x1f8] sm:$0xff] %vm977_vm2, %v976_v34 }
 0x182 PF: > { %s13_s12 = sadd.s32 1, %s1240_s12  }
 0x183   : > { %p10_p4 = scmp.ge.s32.totalorder %s13_s12, 6  }
 0x185   :  { %12 = sbr.rel (!%p10_p4) target bundleno = 1 (0x1), region = 62 }

</bundles_post_ra>
